<compile_context>
chip_gen: v5e
topology: v5e:2x2
jax: 0.10.0
libtpu: 0.0.40
codegen_flags: <defaults>
</compile_context>

<pallas_src>
import functools

import jax
import jax.numpy as jnp
from jax.experimental import pallas as pl
from jax.experimental.pallas import tpu as pltpu


def _round_up(x, m):
    return (x + m - 1) // m * m


# ---------------------------------------------------------------------------
# Parameter packing: six tensors into one aligned slab (PyTorch layouts).
# Offsets are multiples of 16 rows -> aligned static slices for f32 and bf16.
# ---------------------------------------------------------------------------
_O_W1X, _O_W1U, _O_B1, _O_W2, _O_B2, _O_W3 = 0, 16, 32, 48, 80, 112


def pack_params(params, n_dims, n_controls, dtype=jnp.float32):
    """params: W1 (16, D+C), b1 (16,), W2 (32, 16), b2 (32,), W3 (D, 32), b3 (D,)."""
    w1, b1, w2, b2, w3, b3 = params
    D, C = n_dims, n_controls
    assert w1.shape == (16, D + C) and b1.shape == (16,)
    assert w2.shape == (32, 16) and b2.shape == (32,)
    assert w3.shape == (D, 32) and b3.shape == (D,)

    rD = _round_up(max(D, 1), 16)
    o_b3 = _O_W3 + rD
    rows = o_b3 + rD
    cols = _round_up(max(D, C, 32), 128)

    slab = jnp.zeros((rows, cols), dtype)
    slab = slab.at[_O_W1X:_O_W1X + 16, 0:D].set(w1[:, :D].astype(dtype))   # W1x
    slab = slab.at[_O_W1U:_O_W1U + 16, 0:C].set(w1[:, D:].astype(dtype))   # W1u
    slab = slab.at[_O_B1:_O_B1 + 16, 0:1].set(b1.reshape(16, 1).astype(dtype))
    slab = slab.at[_O_W2:_O_W2 + 32, 0:16].set(w2.astype(dtype))           # W2
    slab = slab.at[_O_B2:_O_B2 + 32, 0:1].set(b2.reshape(32, 1).astype(dtype))
    slab = slab.at[_O_W3:_O_W3 + D, 0:32].set(w3.astype(dtype))            # W3
    slab = slab.at[o_b3:o_b3 + D, 0:1].set(b3.reshape(D, 1).astype(dtype))
    return slab, o_b3


def _mlp_kernel(x_ref, u_ref, p_ref, out_ref, *, D, C, o_b3):
    # Static, aligned slices into the resident parameter slab (tiny).
    w1x = p_ref[_O_W1X:_O_W1X + 16, 0:D]                    # (16, D)
    w1u = p_ref[_O_W1U:_O_W1U + 16, 0:C]                    # (16, C)
    b1 = p_ref[_O_B1:_O_B1 + 16, 0:1].astype(jnp.float32)   # (16, 1)
    w2 = p_ref[_O_W2:_O_W2 + 32, 0:16]                      # (32, 16)
    b2 = p_ref[_O_B2:_O_B2 + 32, 0:1].astype(jnp.float32)   # (32, 1)
    w3 = p_ref[_O_W3:_O_W3 + D, 0:32]                       # (D, 32)
    b3 = p_ref[o_b3:o_b3 + D, 0:1].astype(jnp.float32)      # (D, 1)

    x = x_ref[...]                                          # (D, tb) batch on lanes
    u = u_ref[...]                                          # (C, tb)

    # Layer 1: split-W1 replaces torch.cat([x, u], dim=1); f32 MXU accumulation.
    h1 = jnp.dot(w1x, x, preferred_element_type=jnp.float32)
    h1 = h1 + jnp.dot(w1u, u, preferred_element_type=jnp.float32)
    h1 = jnp.maximum(h1 + b1, 0.0)                          # (16, tb)

    h2 = jnp.dot(w2, h1.astype(w2.dtype), preferred_element_type=jnp.float32)
    h2 = jnp.maximum(h2 + b2, 0.0)                          # (32, tb)

    y = jnp.dot(w3, h2.astype(w3.dtype), preferred_element_type=jnp.float32)
    out_ref[...] = (y + b3).astype(out_ref.dtype)           # (D, tb) lane-dense store


def _choose_tile(batch, tile_b):
    """Lane-tile size: multiple of 128 (or the full batch extent)."""
    cap = max(128, _round_up(min(int(tile_b), 1 << 17), 128))
    if batch <= cap:
        # One full-extent block; split 2-way (for the v7x megacore) only when
        # it is free, i.e. both halves stay 128-aligned with no padding.
        if batch >= 4096 and batch % 256 == 0:
            return batch // 2
        return batch
    return cap


def dynamics_model_forward_fm(x_fm, u_fm, params, *, tile_b=32768,
                              compute_dtype=None, out_dtype=None):
    """Feature-major fast path.

    x_fm: (n_dims, B), u_fm: (n_controls, B) -> (n_dims, B).
    Zero host-side copies: inputs are consumed in place, output is written
    lane-dense straight from the kernel.
    """
    D, B = x_fm.shape
    C, Bu = u_fm.shape
    assert Bu == B and B >= 1
    n_dims = params[4].shape[0]
    assert params[0].shape == (16, D + C)

    if compute_dtype is None:
        compute_dtype = x_fm.dtype
    if out_dtype is None:
        out_dtype = x_fm.dtype
    c_isz = jnp.dtype(compute_dtype).itemsize
    o_isz = jnp.dtype(out_dtype).itemsize
    in_isz = jnp.dtype(x_fm.dtype).itemsize

    slab, o_b3 = pack_params(params, D, C, dtype=compute_dtype)

    tb = _choose_tile(B, tile_b)
    # Ragged final block when tb does not divide B: out-of-range input lanes
    # hold unspecified values (column-local only) and out-of-range output
    # lanes are discarded, so no padding copy is ever made.
    n_steps = pl.cdiv(B, tb)

    kernel = functools.partial(_mlp_kernel, D=D, C=C, o_b3=o_b3)

    flops = 2 * B * ((D + C) * 16 + 16 * 32 + 32 * n_dims)
    bytes_accessed = (B * (D + C) * in_isz + slab.size * c_isz
                      + B * n_dims * o_isz)

    # Double-buffered x/u/out tiles + resident slab (double-buffered by the
    # default pipeline; constant index_map means it is only DMA'd once) +
    # f32 intermediates + margin.  v5e's scoped default is 16 MiB, so set the
    # limit explicitly; cap at 64 MiB (v7x physical).
    vmem_need = (2 * tb * (D + C) * in_isz
                 + 2 * tb * n_dims * o_isz
                 + 2 * slab.size * c_isz
                 + tb * 64 * 4 + (4 << 20))
    vmem_limit = int(min(max(vmem_need, 32 << 20), 64 << 20))

    return pl.pallas_call(
        kernel,
        out_shape=jax.ShapeDtypeStruct((n_dims, B), out_dtype),
        grid=(n_steps,),
        in_specs=[
            pl.BlockSpec((D, tb), lambda i: (0, i)),       # x lane-tile
            pl.BlockSpec((C, tb), lambda i: (0, i)),       # u lane-tile
            pl.BlockSpec(slab.shape, lambda i: (0, 0)),    # params: resident
        ],
        out_specs=pl.BlockSpec((n_dims, tb), lambda i: (0, i)),
        compiler_params=pltpu.CompilerParams(
            dimension_semantics=("parallel",),             # megacore on v7x
            vmem_limit_bytes=vmem_limit),
        cost_estimate=pl.CostEstimate(flops=flops, transcendentals=0,
                                      bytes_accessed=bytes_accessed),
    )(x_fm, u_fm, slab)


def dynamics_model_forward(x, u, params, *, tile_b=32768, compute_dtype=None):
    """PyTorch-layout adapter: x (B, n_dims), u (B, n_controls) -> (B, n_dims).

    The boundary transposes here are the only host-side copies; callers that
    can keep a feature-major (features, batch) layout should call
    dynamics_model_forward_fm directly and pay zero copies.
    """
    y_fm = dynamics_model_forward_fm(x.T, u.T, params, tile_b=tile_b,
                                     compute_dtype=compute_dtype)
    return y_fm.T


def init_params(key, n_dims, n_controls):
    """Deterministic init matching PyTorch nn.Linear shapes (out, in)."""
    d_in = n_dims + n_controls
    dims = [(d_in, 16), (16, 32), (32, n_dims)]
    params = []
    for fan_in, fan_out in dims:
        kw, kb, key = jax.random.split(key, 3)
        bound = 1.0 / (fan_in ** 0.5)
        w = jax.random.uniform(kw, (fan_out, fan_in), jnp.float32,
                               minval=-bound, maxval=bound)
        b = jax.random.uniform(kb, (fan_out,), jnp.float32,
                               minval=-bound, maxval=bound)
        params.extend([w, b])
    return tuple(params)


if __name__ == "__main__":
    n_dims, n_controls, batch = 4, 2, 8
    key = jax.random.PRNGKey(0)
    kx, ku, kp = jax.random.split(key, 3)

    x = jax.random.normal(kx, (batch, n_dims), jnp.float32)
    u = jax.random.normal(ku, (batch, n_controls), jnp.float32)
    params = init_params(kp, n_dims, n_controls)

    def reference(xb, ub):
        w1, b1, w2, b2, w3, b3 = params
        xu = jnp.concatenate([xb, ub], axis=1)
        h = jnp.maximum(xu @ w1.T + b1, 0.0)
        h = jnp.maximum(h @ w2.T + b2, 0.0)
        return h @ w3.T + b3

    # 1) PyTorch-layout adapter, tiny batch (single full-extent block).
    out = dynamics_model_forward(x, u, params)
    jax.block_until_ready(out)
    assert out.shape == (batch, n_dims)
    assert jnp.allclose(out, reference(x, u), atol=1e-5, rtol=1e-5)

    # 2) Feature-major fast path with a multi-step pipelined grid
    #    (two exact 128-lane batch tiles) to exercise the tiling.
    B2 = 256
    kx2, ku2 = jax.random.split(jax.random.PRNGKey(1), 2)
    x2 = jax.random.normal(kx2, (B2, n_dims), jnp.float32)
    u2 = jax.random.normal(ku2, (B2, n_controls), jnp.float32)
    out2 = dynamics_model_forward_fm(x2.T, u2.T, params, tile_b=128)
    jax.block_until_ready(out2)
    assert out2.shape == (n_dims, B2)
    assert jnp.allclose(out2.T, reference(x2, u2), atol=1e-5, rtol=1e-5)

    print("KERNEL_OK")
</pallas_src>

<mosaic_0001>
module attributes {stable_mosaic.version = 11 : i64} {
  func.func @_mlp_kernel(%arg0: i32, %arg1: memref<4x8xf32, #tpu.memory_space<vmem>>, %arg2: memref<2x8xf32, #tpu.memory_space<vmem>>, %arg3: memref<144x128xf32, #tpu.memory_space<vmem>>, %arg4: memref<4x8xf32, #tpu.memory_space<vmem>>) attributes {dimension_semantics = [#tpu.dimension_semantics<parallel>], iteration_bounds = array<i64: 1>, scalar_prefetch = 0 : i64, scratch_operands = 0 : i64, tpu.core_type = #tpu.core_type<tc>, window_params = [{transform_indices = @transform_0, window_bounds = array<i64: 4, 8>}, {transform_indices = @transform_1, window_bounds = array<i64: 2, 8>}, {pipeline_mode = #tpu.pipeline_mode<synchronous>, transform_indices = @transform_2, window_bounds = array<i64: 144, 128>}, {transform_indices = @transform_3, window_bounds = array<i64: 4, 8>}]} {
    %c0 = arith.constant 0 : index
    %c0_0 = arith.constant 0 : index
    %0 = vector.load %arg3[%c0, %c0_0] : memref<144x128xf32, #tpu.memory_space<vmem>>, vector<16x4xf32>
    %c16 = arith.constant 16 : index
    %c0_1 = arith.constant 0 : index
    %1 = vector.load %arg3[%c16, %c0_1] : memref<144x128xf32, #tpu.memory_space<vmem>>, vector<16x2xf32>
    %c32 = arith.constant 32 : index
    %c0_2 = arith.constant 0 : index
    %2 = vector.load %arg3[%c32, %c0_2] : memref<144x128xf32, #tpu.memory_space<vmem>>, vector<16x1xf32>
    %c48 = arith.constant 48 : index
    %c0_3 = arith.constant 0 : index
    %3 = vector.load %arg3[%c48, %c0_3] : memref<144x128xf32, #tpu.memory_space<vmem>>, vector<32x16xf32>
    %c80 = arith.constant 80 : index
    %c0_4 = arith.constant 0 : index
    %4 = vector.load %arg3[%c80, %c0_4] : memref<144x128xf32, #tpu.memory_space<vmem>>, vector<32x1xf32>
    %c112 = arith.constant 112 : index
    %c0_5 = arith.constant 0 : index
    %5 = vector.load %arg3[%c112, %c0_5] : memref<144x128xf32, #tpu.memory_space<vmem>>, vector<4x32xf32>
    %c128 = arith.constant 128 : index
    %c0_6 = arith.constant 0 : index
    %6 = vector.load %arg3[%c128, %c0_6] : memref<144x128xf32, #tpu.memory_space<vmem>>, vector<4x1xf32>
    %c0_7 = arith.constant 0 : index
    %c0_8 = arith.constant 0 : index
    %7 = vector.load %arg1[%c0_7, %c0_8] : memref<4x8xf32, #tpu.memory_space<vmem>>, vector<4x8xf32>
    %c0_9 = arith.constant 0 : index
    %c0_10 = arith.constant 0 : index
    %8 = vector.load %arg2[%c0_9, %c0_10] : memref<2x8xf32, #tpu.memory_space<vmem>>, vector<2x8xf32>
    %cst = arith.constant dense<0.000000e+00> : vector<16x8xf32>
    %9 = tpu.matmul %0, %7, %cst {dimension_numbers = #tpu.dot_dimension_numbers<[1], [0], [0], [1], [0, 0, 1, 1], [], []>} : vector<16x4xf32>, vector<4x8xf32>, vector<16x8xf32> -> vector<16x8xf32>
    %cst_11 = arith.constant dense<0.000000e+00> : vector<16x8xf32>
    %10 = tpu.matmul %1, %8, %cst_11 {dimension_numbers = #tpu.dot_dimension_numbers<[1], [0], [0], [1], [0, 0, 1, 1], [], []>} : vector<16x2xf32>, vector<2x8xf32>, vector<16x8xf32> -> vector<16x8xf32>
    %11 = arith.addf %9, %10 : vector<16x8xf32>
    %12 = vector.broadcast %2 : vector<16x1xf32> to vector<16x8xf32>
    %13 = arith.addf %11, %12 : vector<16x8xf32>
    %cst_12 = arith.constant 0.000000e+00 : f32
    %14 = vector.broadcast %cst_12 : f32 to vector<16x8xf32>
    %15 = arith.maximumf %13, %14 : vector<16x8xf32>
    %cst_13 = arith.constant dense<0.000000e+00> : vector<32x8xf32>
    %16 = tpu.matmul %3, %15, %cst_13 {dimension_numbers = #tpu.dot_dimension_numbers<[1], [0], [0], [1], [0, 0, 1, 1], [], []>} : vector<32x16xf32>, vector<16x8xf32>, vector<32x8xf32> -> vector<32x8xf32>
    %17 = vector.broadcast %4 : vector<32x1xf32> to vector<32x8xf32>
    %18 = arith.addf %16, %17 : vector<32x8xf32>
    %cst_14 = arith.constant 0.000000e+00 : f32
    %19 = vector.broadcast %cst_14 : f32 to vector<32x8xf32>
    %20 = arith.maximumf %18, %19 : vector<32x8xf32>
    %cst_15 = arith.constant dense<0.000000e+00> : vector<4x8xf32>
    %21 = tpu.matmul %5, %20, %cst_15 {dimension_numbers = #tpu.dot_dimension_numbers<[1], [0], [0], [1], [0, 0, 1, 1], [], []>} : vector<4x32xf32>, vector<32x8xf32>, vector<4x8xf32> -> vector<4x8xf32>
    %22 = vector.broadcast %6 : vector<4x1xf32> to vector<4x8xf32>
    %23 = arith.addf %21, %22 : vector<4x8xf32>
    %c0_16 = arith.constant 0 : index
    %c0_17 = arith.constant 0 : index
    %24 = vector.load %arg4[%c0_16, %c0_17] : memref<4x8xf32, #tpu.memory_space<vmem>>, vector<4x8xf32>
    tpu.vector_store %arg4[%c0_16, %c0_17], %23 {strides = array<i32>} : memref<4x8xf32, #tpu.memory_space<vmem>>, vector<4x8xf32>,
    return
  }
  func.func @transform_0(%arg0: i32) -> (i32, i32) {
    %c0_i32 = arith.constant 0 : i32
    %c0_i32_0 = arith.constant 0 : i32
    return %c0_i32, %arg0 : i32, i32
  }
  func.func @transform_1(%arg0: i32) -> (i32, i32) {
    %c0_i32 = arith.constant 0 : i32
    %c0_i32_0 = arith.constant 0 : i32
    return %c0_i32, %arg0 : i32, i32
  }
  func.func @transform_2(%arg0: i32) -> (i32, i32) {
    %c0_i32 = arith.constant 0 : i32
    %c0_i32_0 = arith.constant 0 : i32
    %c0_i32_1 = arith.constant 0 : i32
    return %c0_i32, %c0_i32_0 : i32, i32
  }
  func.func @transform_3(%arg0: i32) -> (i32, i32) {
    %c0_i32 = arith.constant 0 : i32
    %c0_i32_0 = arith.constant 0 : i32
    return %c0_i32, %arg0 : i32, i32
  }
}

</mosaic_0001>

<bundles_post_ra>
// kernel: tpu_custom_call.1
= control target key start
LH: loop header
LB: loop body
LE: loop exit
PB: predicated region body
PF: predicated region fallthrough
CT: control target
= control target key end

     0   :  { %8 = vsyncpa [#allocation3], 0  ;;  %s439_s0 = inlined_call_operand.hbm [shape: f32[4,8], index: 0, kind: input, shape index: {}]   ;;  %s440_s1 = inlined_call_operand.hbm [shape: f32[2,8], index: 1, kind: input, shape index: {}]   ;;  %s441_s2 = inlined_call_operand.hbm [shape: f32[144,128], index: 2, kind: input, shape index: {}]   ;;  %s442_s3 = inlined_call_operand.hbm [shape: f32[4,8], index: 3, kind: output, shape index: {}]  }
   0x1   :  { %9 = vsyncpa [#allocation6], 0  ;;  %s27_s14 = sshll.u32 %s440_s1, 4  ;;  %s28_s14 = int_to_ptr.hbm [resolvable:$true] %s27_s14 }
   0x2   :  { %10 = vsyncpa [#allocation4], 0  ;;  %s398_s15 = smov [#allocation5]   ;;  %s16_s19 = sshll.u32 %s439_s0, 4  ;;  %s17_s19 = int_to_ptr.hbm [resolvable:$true] %s16_s19 }
   0x3   :  { %s29_s16 = sshll.u32 %s398_s15, 4  ;;  %s399_s20 = smov [#allocation2]   ;;  %s30_s16 = int_to_ptr.vmem [resolvable:$true] %s29_s16 }
   0x4   :  { %32 = dma.hbm_to_vmem [thread:$0]  %s28_s14, 32, %s30_s16, [#allocation6]  }
   0x5   :  { %s18_s21 = sshll.u32 %s399_s20, 4  ;;  %s37_s24 = sshll.u32 %s441_s2, 4  ;;  %s19_s21 = int_to_ptr.vmem [resolvable:$true] %s18_s21  ;;  %s38_s24 = int_to_ptr.hbm [resolvable:$true] %s37_s24 }
   0x6   :  { %21 = dma.hbm_to_vmem [thread:$0]  %s17_s19, 64, %s19_s21, [#allocation3]  }
   0x7   :  { %s400_s1 = smov [#allocation7]   ;;  %s401_s26 = smov 128  }
   0x8   :  { %s39_s25 = sshll.u32 %s400_s1, 4  ;;  %s402_s27 = smov 8   ;;  %s40_s25 = int_to_ptr.vmem [resolvable:$true] %s39_s25 }
   0x9   :  { %45 = dma.hbm_to_vmem [thread:$0]  %s38_s24, 2304, %s40_s25, [#allocation6], %s401_s26, %s401_s26, %s402_s27  }
   0xa   :  { %392 = dma.done.wait [#allocation3], 64  }
   0xb   :  { %393 = vsyncadd [#allocation3], 4294967232 }
   0xc   :  { %394 = dma.done.wait [#allocation6], 2336  }
   0xd   :  { %395 = vsyncadd [#allocation6], 4294964960  ;;  %v403_v0 = vmov 0   ;;  %vm83_vm0 = vcmask 1041408   ;;  %vm117_vm1 = vcmask 1043456   ;;  %vm76_vm2 = vcmask 15360  }
   0xe   :  { %293 = vset.pattern.permute.xlu0 %v403_v0  ;;  %294 = vset.pattern.permute.xlu1 %v403_v0  ;;  %v75_v1 = vld [vmem:[#allocation5] sm:$0x3]  ;;  %v74_v2 = vld [vmem:[#allocation2] sm:$0xf]  ;;  %v63_v3 = vld [vmem:[#allocation7 + $0x28] sm:$0xff]  ;;  %vm110_vm3 = vcmask 31744  }
   0xf   :  { %295 = vset.pattern.permute.xlu2 %v403_v0  ;;  %273 = vmatpush.msk.msra.mxu0 %vm83_vm0, %v75_v1  ;;  %v60_v4 = vld [vmem:[#allocation7 + $0x10] sm:$0xff]  ;;  %v58_v5 = vld [vmem:[#allocation7] sm:$0xff]  ;;  %v61_v7 = vld [vmem:[#allocation7 + $0x18] sm:$0xff]  ;;  %vm178_vm4 = vcmask 130048   ;;  %vm229_vm5 = vcmask 261120   ;;  %s404_s0 = smov [#allocation8]  }
  0x10   :  { %276 = vmatpush.msk.msra.mxu1 %vm117_vm1, %v74_v2  ;;  %151 = vperm.xlu0 %293, %v63_v3   ;;  %v62_v6 = vld [vmem:[#allocation7 + $0x20] sm:$0xff]  ;;  %v59_v8 = vld [vmem:[#allocation7 + $0x8] sm:$0xff]  ;;  %v69_v14 = vld [vmem:[#allocation7 + $0x58] sm:$0xff]  ;;  %s260_s2 = sshll.u32 %s404_s0, 4  ;;  %s262_s30 = sshll.u32 %s442_s3, 4  ;;  %vm253_vm6 = vcmask 60416   ;;  %s261_s2 = int_to_ptr.vmem [resolvable:$true] %s260_s2  ;;  %s263_s30 = int_to_ptr.hbm [resolvable:$true] %s262_s30 }
  0x11   :  { %274 = vmatmul.msk.f32.vlgmr.msra.gmra.mxu0 %vm76_vm2, %v60_v4  ;;  %277 = vmatmul.msk.f32.vlgmr.msra.gmra.mxu1 %vm110_vm3, %v58_v5  ;;  %v73_v9 = vld [vmem:[#allocation7 + $0x80] sm:$0xf]  ;;  %v71_v13 = vld [vmem:[#allocation7 + $0x68] sm:$0xff]  ;;  %v68_v19 = vld [vmem:[#allocation7 + $0x50] sm:$0xff] }
  0x12   :  { %175 = vperm.xlu1 %294, %v71_v13   ;;  %165 = vperm.xlu2 %295, %v69_v14   ;;  %v70_v18 = vld [vmem:[#allocation7 + $0x60] sm:$0xff]  ;;  %v64_v26 = vld [vmem:[#allocation7 + $0x30] sm:$0xff]  ;;  %v67_v27 = vld [vmem:[#allocation7 + $0x48] sm:$0xff] }
  0x13   :  { %v65_v28 = vld [vmem:[#allocation7 + $0x38] sm:$0xff]  ;;  %v66_v29 = vld [vmem:[#allocation7 + $0x40] sm:$0xff]  ;;  %v72_v46 = vld [vmem:[#allocation7 + $0x70] sm:$0xf] }
  0x18   :  { %146 = vperm.xlu0 %293, %v62_v6  }
  0x19   :  { %275 = vmatmul.msk.f32.gmra.mxu0 %vm76_vm2, %v61_v7  ;;  %278 = vmatmul.msk.f32.gmra.mxu1 %vm110_vm3, %v59_v8 }
  0x1a   :  { %170 = vperm.xlu1 %294, %v70_v18   ;;  %160 = vperm.xlu2 %295, %v68_v19  }
  0x20   :  { %226 = vperm.xlu0 %293, %v73_v9  }
  0x6c   :  { %v166_v35 = vpop.permute.xlu2 %165 }
  0x74   :  { %v161_v37 = vpop.permute.xlu2 %160 }
  0x82   :  { %v152_v11 = vpop.permute.xlu0 %151 }
  0x84   :  { %v176_v30 = vpop.permute.xlu1 %175 }
  0x8a   :  { %v147_v21 = vpop.permute.xlu0 %146 }
  0x8c   :  { %v171_v38 = vpop.permute.xlu1 %170 }
  0x8e   :  { %v104_v10 = vpop.f32.mrf.mxu0  ;;  %v138_v12 = vpop.f32.mrf.mxu1 }
  0x8f   :  { %v139_v15 = vadd.f32 %v138_v12, %v104_v10 }
  0x91   :  { %v154_v23 = vadd.f32 %v147_v21, %v139_v15 }
  0x92   :  { %v227_v47 = vpop.permute.xlu0 %226 }
  0x93   :  { %v156_v25 = vmax.f32 %v154_v23, 0.0 }
  0x96   :  { %v107_v16 = vpop.f32.mrf.mxu0  ;;  %v141_v17 = vpop.f32.mrf.mxu1 }
  0x97   :  { %v142_v20 = vadd.f32 %v141_v17, %v107_v16 }
  0x99   :  { %v155_v22 = vadd.f32 %v152_v11, %v142_v20 }
  0x9b   :  { %v157_v24 = vmax.f32 %v155_v22, 0.0 }
  0x9d   :  { %205 = vmatpush.msra.mxu2 %v157_v24  ;;  %284 = vmatpush.msra.mxu3 %v157_v24 }
  0x9f   :  { %206 = vmatpush.msra.mxu2 %v156_v25  ;;  %285 = vmatpush.msra.mxu3 %v156_v25 }
  0xa0   :  { %279 = vmatmul.msk.f32.vlgmr.msra.gmra.mxu2 %vm178_vm4, %v64_v26  ;;  %282 = vmatmul.msk.f32.vlgmr.msra.gmra.mxu3 %vm178_vm4, %v67_v27 }
  0xa8   :  { %280 = vmatmul.msk.f32.gmra.mxu2 %vm178_vm4, %v65_v28 }
  0xb0   :  { %281 = vmatmul.msk.f32.gmra.mxu2 %vm178_vm4, %v66_v29 }
 0x123   :  { %v208_v31 = vpop.f32.mrf.mxu2  ;;  %v217_v32 = vpop.f32.mrf.mxu3 }
 0x124   :  { %v218_v33 = vadd.f32 %v217_v32, %v176_v30  ;;  %v209_v42 = vadd.f32 %v208_v31, %v161_v37 }
 0x126   :  { %v223_v34 = vmax.f32 %v218_v33, 0.0  ;;  %v220_v45 = vmax.f32 %v209_v42, 0.0 }
 0x128   :  { %245 = vmatpush.msrb.mxu3 %v223_v34 }
 0x12b   :  { %v211_v36 = vpop.f32.mrf.mxu2 }
 0x12c   :  { %v212_v40 = vadd.f32 %v211_v36, %v166_v35 }
 0x12e   :  { %v221_v44 = vmax.f32 %v212_v40, 0.0 }
 0x133   :  { %v214_v39 = vpop.f32.mrf.mxu2 }
 0x134   :  { %v215_v41 = vadd.f32 %v214_v39, %v171_v38 }
 0x136   :  { %v222_v43 = vmax.f32 %v215_v41, 0.0 }
 0x138   :  { %246 = vmatpush.msrb.mxu3 %v222_v43 }
 0x13a   :  { %247 = vmatpush.msrb.mxu3 %v221_v44 }
 0x13c   :  { %248 = vmatpush.msrb.mxu3 %v220_v45 }
 0x13d   :  { %283 = vmatmul.msk.f32.vlgmr.msrb.gmra.mxu3 %vm229_vm5, %v72_v46 }
 0x1c0   :  { %v250_v48 = vpop.f32.mrf.mxu3 }
 0x1c1   :  { %v251_v49 = vadd.f32 %v250_v48, %v227_v47 }
 0x1c3   :  { %254 = vst.msk [vmem:[#allocation8] sm:$0xf] %vm253_vm6, %v251_v49 }
 0x1c4   :  { %265 = dma.vmem_to_hbm [thread:$0]  %s261_s2, 64, %s263_s30, [#allocation4]  }
 0x1c5   :  { %396 = dma.done.wait [#allocation4], 64  }
 0x1c6   :  { %397 = vsyncadd [#allocation4], 4294967232 }
 0x1c7   :  { %270 = vsyncpa [#allocation3], 1 }
 0x1c8   :  { %271 = vsyncpa [#allocation6], 1 }
 0x1c9   :  { %272 = vsyncpa [#allocation4], 1 }

</bundles_post_ra>
